<compile_context>
chip_gen: v5e
topology: v5e:2x2
jax: 0.10.0
libtpu: 0.0.40
codegen_flags: <defaults>
</compile_context>

<pallas_src>
import jax
import jax.numpy as jnp
from jax.experimental import pallas as pl
from jax.experimental.pallas import tpu as pltpu

_MIB = 1024 * 1024


def _round_up(n, m):
    return ((n + m - 1) // m) * m


def _padded_bytes(rows, cols, dtype):
    """Lane/sublane-padded VMEM footprint of a 2-D block: last dim -> 128
    lanes, second-last -> 8/16/32 sublanes depending on dtype packing."""
    item = jnp.dtype(dtype).itemsize
    sub = {4: 8, 2: 16, 1: 32}.get(item, 8)
    return _round_up(max(rows, 1), sub) * _round_up(max(cols, 1), 128) * item


def _vmem_plan():
    """(vmem_limit_bytes, block_budget_bytes) sized per TPU generation.

    Falls back to the most constrained generation (v7x, 64 MiB physical VMEM)
    when hardware info is unavailable (e.g. interpret mode), so the plan is
    always safe on v5e / v6e / v7x.
    """
    phys = 64 * _MIB
    try:
        phys = int(pltpu.get_tpu_info().vmem_capacity_bytes)
    except Exception:  # CPU / interpret mode or older jax: keep the v7x floor
        pass
    vmem_limit = min((phys * 3) // 4, 64 * _MIB)   # v7x: 48 MiB, v5e/v6e: 64 MiB
    block_budget = vmem_limit - 12 * _MIB          # headroom for compiler scratch
    return vmem_limit, block_budget


def _tile_vmem_bytes(tb, dim, mid, n_store, act_dtype, out_dtype):
    """Double-buffered, lane-padded footprint of one grid step's blocks."""
    x_bytes = 2 * _padded_bytes(tb, dim, act_dtype)
    o_bytes = 2 * _padded_bytes(tb, n_store, out_dtype)
    w_bytes = 2 * (_padded_bytes(dim, mid, act_dtype)
                   + _padded_bytes(1, mid, jnp.float32)
                   + _padded_bytes(mid, n_store, act_dtype)
                   + _padded_bytes(1, n_store, jnp.float32))
    return x_bytes + o_bytes + w_bytes


def d_kernel_2class(x_ref, w1_ref, b1_ref, w2d_ref, b2d_ref, o_ref):
    # x_ref  : (TB, dim)   activation dtype (f32 or bf16)
    # w1_ref : (dim, mid)  activation dtype
    # b1_ref : (1, mid)    f32
    # w2d_ref: (mid, 1)    activation dtype  (= w2[:, 0] - w2[:, 1])
    # b2d_ref: (1, 1)      f32               (= b2[0]  - b2[1])
    # o_ref  : (TB, 1)     p(class 0); the wrapper emits [p, 1 - p]
    x = x_ref[...]
    h = jnp.dot(x, w1_ref[...], preferred_element_type=jnp.float32) + b1_ref[...]
    h = jnp.maximum(h, 0.0)
    # Logit difference: one (mid, 1) column instead of a (mid, 2) matmul.
    d = jnp.dot(h.astype(w2d_ref.dtype), w2d_ref[...],
                preferred_element_type=jnp.float32) + b2d_ref[...]
    # softmax([z0, z1])[0] == sigmoid(z0 - z1).  Exact divide so [p, 1-p] sums
    # to 1 bit-exactly.  Garbage rows of a partial last tile flow through exp()
    # harmlessly: rows are independent and OOB output rows are not written back.
    o_ref[...] = (1.0 / (1.0 + jnp.exp(-d))).astype(o_ref.dtype)


def d_kernel_softmax(x_ref, w1_ref, b1_ref, w2_ref, b2_ref, o_ref):
    # General n_out path: numerically stable softmax, EXACT normalization
    # (the approx reciprocal previously broke the sum-to-1 property).
    x = x_ref[...]
    h = jnp.dot(x, w1_ref[...], preferred_element_type=jnp.float32) + b1_ref[...]
    h = jnp.maximum(h, 0.0)
    logits = jnp.dot(h.astype(w2_ref.dtype), w2_ref[...],
                     preferred_element_type=jnp.float32) + b2_ref[...]
    m = jnp.max(logits, axis=1, keepdims=True)
    e = jnp.exp(logits - m)
    o_ref[...] = (e / jnp.sum(e, axis=1, keepdims=True)).astype(o_ref.dtype)


def d_forward(x, w1, b1, w2, b2, *, block_b=8192, out_dtype=jnp.float32,
              small_batch_jnp=False):
    """x: (B, *) flattened to (B, dim). Returns (B, n_out) softmax probs."""
    B = x.shape[0]
    x2 = x.reshape(B, -1)
    dim = x2.shape[1]
    mid = w1.shape[1]
    n_out = w2.shape[1]
    act_dtype = x2.dtype
    act_itemsize = jnp.dtype(act_dtype).itemsize
    out_itemsize = jnp.dtype(out_dtype).itemsize

    # Optional XLA-fusion short circuit for tiny batches (single-tile regime,
    # where a pallas_call is pure launch/prologue overhead).  Disabled by
    # default so the Pallas path is always exercised.
    if small_batch_jnp and B <= 2048:
        h = jnp.maximum(x2.astype(jnp.float32) @ w1.astype(jnp.float32) + b1, 0.0)
        return jax.nn.softmax(h @ w2.astype(jnp.float32) + b2, axis=1).astype(out_dtype)

    n_store = 1 if n_out == 2 else n_out   # 2-class path stores only p(class 0)

    # Batch tile: start large (amortize per-grid-step overhead), multiple of 16
    # (bf16 sublane packing), then shrink until the *padded*, double-buffered
    # footprint fits this generation's VMEM budget.
    vmem_limit, block_budget = _vmem_plan()
    tb = _round_up(min(block_b, _round_up(B, 16)), 16)
    while tb > 256 and _tile_vmem_bytes(tb, dim, mid, n_store,
                                        act_dtype, out_dtype) > block_budget:
        tb = _round_up(tb // 2, 16)
    grid = (pl.cdiv(B, tb),)

    cost = pl.CostEstimate(
        flops=2 * B * (dim * mid + mid * n_store),
        transcendentals=B * (1 if n_out == 2 else n_out),
        bytes_accessed=(B * dim * act_itemsize          # x, streamed
                        + dim * mid * act_itemsize      # w1, read once
                        + mid * 4                       # b1
                        + mid * n_store * act_itemsize  # w2 (or its diff column)
                        + n_store * 4                   # b2
                        + B * n_store * out_itemsize),  # output
    )
    cparams = pltpu.CompilerParams(
        dimension_semantics=("parallel",),   # lets v7x shard batch steps over 2 TCs
        vmem_limit_bytes=vmem_limit,
    )

    b1r = b1.reshape(1, mid).astype(jnp.float32)

    if n_out == 2:
        w2d = (w2[:, 0:1] - w2[:, 1:2]).astype(act_dtype)        # (mid, 1)
        b2d = (b2[0] - b2[1]).reshape(1, 1).astype(jnp.float32)  # (1, 1)
        p0 = pl.pallas_call(
            d_kernel_2class,
            out_shape=jax.ShapeDtypeStruct((B, 1), out_dtype),
            grid=grid,
            in_specs=[
                pl.BlockSpec((tb, dim), lambda i: (i, 0)),   # x: streamed per tile
                pl.BlockSpec((dim, mid), lambda i: (0, 0)),  # weights: VMEM-resident
                pl.BlockSpec((1, mid), lambda i: (0, 0)),
                pl.BlockSpec((mid, 1), lambda i: (0, 0)),
                pl.BlockSpec((1, 1), lambda i: (0, 0)),
            ],
            out_specs=pl.BlockSpec((tb, 1), lambda i: (i, 0)),
            compiler_params=cparams,
            cost_estimate=cost,
        )(x2, w1.astype(act_dtype), b1r, w2d, b2d)
        one = jnp.asarray(1.0, dtype=out_dtype)
        return jnp.concatenate([p0, one - p0], axis=1)

    b2r = b2.reshape(1, n_out).astype(jnp.float32)
    return pl.pallas_call(
        d_kernel_softmax,
        out_shape=jax.ShapeDtypeStruct((B, n_out), out_dtype),
        grid=grid,
        in_specs=[
            pl.BlockSpec((tb, dim), lambda i: (i, 0)),
            pl.BlockSpec((dim, mid), lambda i: (0, 0)),
            pl.BlockSpec((1, mid), lambda i: (0, 0)),
            pl.BlockSpec((mid, n_out), lambda i: (0, 0)),
            pl.BlockSpec((1, n_out), lambda i: (0, 0)),
        ],
        out_specs=pl.BlockSpec((tb, n_out), lambda i: (i, 0)),
        compiler_params=cparams,
        cost_estimate=cost,
    )(x2, w1.astype(act_dtype), b1r, w2.astype(act_dtype), b2r)


def init_params(key, dim=20, mid_dim=128, n_out=2):
    """Deterministic init mimicking nn.Linear (uniform +-1/sqrt(fan_in)).
    Weights returned already transposed to (in, out)."""
    k1, k2, k3, k4 = jax.random.split(key, 4)
    bnd1 = 1.0 / jnp.sqrt(dim)
    bnd2 = 1.0 / jnp.sqrt(mid_dim)
    w1 = jax.random.uniform(k1, (dim, mid_dim), jnp.float32, -bnd1, bnd1)
    b1 = jax.random.uniform(k2, (mid_dim,), jnp.float32, -bnd1, bnd1)
    w2 = jax.random.uniform(k3, (mid_dim, n_out), jnp.float32, -bnd2, bnd2)
    b2 = jax.random.uniform(k4, (n_out,), jnp.float32, -bnd2, bnd2)
    return w1, b1, w2, b2


def _reference(x, w1, b1, w2, b2):
    x2 = x.reshape(x.shape[0], -1).astype(jnp.float32)
    h = jnp.maximum(x2 @ w1 + b1, 0.0)
    logits = h @ w2 + b2
    return jax.nn.softmax(logits, axis=1)


if __name__ == "__main__":
    key = jax.random.PRNGKey(0)
    kx, kp, kx2, kx3, kp2 = jax.random.split(key, 5)

    dim, n_view = 20, 2
    batch = 8
    x = jax.random.normal(kx, (batch, dim), dtype=jnp.float32)
    w1, b1, w2, b2 = init_params(kp, dim=dim, mid_dim=128, n_out=n_view)

    # --- f32, 2-class fast path --------------------------------------------
    out = jax.block_until_ready(d_forward(x, w1, b1, w2, b2))
    ref = _reference(x, w1, b1, w2, b2)
    assert out.shape == (batch, n_view)
    assert jnp.allclose(out, ref, atol=2e-3, rtol=2e-3)
    assert jnp.allclose(jnp.sum(out, axis=1), 1.0, atol=1e-3)

    # --- bf16 activations (half HBM traffic, f32 MXU accumulation) ----------
    out_bf16 = jax.block_until_ready(d_forward(x.astype(jnp.bfloat16), w1, b1, w2, b2))
    assert jnp.allclose(out_bf16, ref, atol=3e-2, rtol=3e-2)

    # --- multi-step batch grid (forces grid > 1 and a partial last tile) ----
    xg = jax.random.normal(kx2, (40, dim), dtype=jnp.float32)
    outg = jax.block_until_ready(d_forward(xg, w1, b1, w2, b2, block_b=16))
    assert jnp.allclose(outg, _reference(xg, w1, b1, w2, b2), atol=2e-3, rtol=2e-3)

    # --- single larger tile with the default (big) block_b ------------------
    xl = jax.random.normal(kx3, (512, dim), dtype=jnp.float32)
    outl = jax.block_until_ready(d_forward(xl, w1, b1, w2, b2))
    assert jnp.allclose(outl, _reference(xl, w1, b1, w2, b2), atol=2e-3, rtol=2e-3)

    # --- general softmax kernel (n_view != 2 fallback path) -----------------
    w1b, b1b, w2b, b2b = init_params(kp2, dim=dim, mid_dim=128, n_out=4)
    out4 = jax.block_until_ready(d_forward(x, w1b, b1b, w2b, b2b))
    assert jnp.allclose(out4, _reference(x, w1b, b1b, w2b, b2b), atol=2e-3, rtol=2e-3)
    assert jnp.allclose(jnp.sum(out4, axis=1), 1.0, atol=1e-3)

    print("KERNEL_OK")
</pallas_src>

<mosaic_0001>
module attributes {stable_mosaic.version = 11 : i64} {
  func.func @d_kernel_2class(%arg0: i32, %arg1: memref<16x20xf32, #tpu.memory_space<vmem>>, %arg2: memref<20x128xf32, #tpu.memory_space<vmem>>, %arg3: memref<1x128xf32, #tpu.memory_space<vmem>>, %arg4: memref<128x1xf32, #tpu.memory_space<vmem>>, %arg5: memref<1x1xf32, #tpu.memory_space<vmem>>, %arg6: memref<16x1xf32, #tpu.memory_space<vmem>>) attributes {dimension_semantics = [#tpu.dimension_semantics<parallel>], iteration_bounds = array<i64: 1>, scalar_prefetch = 0 : i64, scratch_operands = 0 : i64, tpu.core_type = #tpu.core_type<tc>, window_params = [{transform_indices = @transform_0, window_bounds = array<i64: 16, 20>}, {pipeline_mode = #tpu.pipeline_mode<synchronous>, transform_indices = @transform_1, window_bounds = array<i64: 20, 128>}, {pipeline_mode = #tpu.pipeline_mode<synchronous>, transform_indices = @transform_2, window_bounds = array<i64: 1, 128>}, {pipeline_mode = #tpu.pipeline_mode<synchronous>, transform_indices = @transform_3, window_bounds = array<i64: 128, 1>}, {pipeline_mode = #tpu.pipeline_mode<synchronous>, transform_indices = @transform_4, window_bounds = array<i64: 1, 1>}, {transform_indices = @transform_5, window_bounds = array<i64: 16, 1>}]} {
    %c0 = arith.constant 0 : index
    %c0_0 = arith.constant 0 : index
    %0 = vector.load %arg1[%c0, %c0_0] : memref<16x20xf32, #tpu.memory_space<vmem>>, vector<16x20xf32>
    %c0_1 = arith.constant 0 : index
    %c0_2 = arith.constant 0 : index
    %1 = vector.load %arg2[%c0_1, %c0_2] : memref<20x128xf32, #tpu.memory_space<vmem>>, vector<20x128xf32>
    %cst = arith.constant dense<0.000000e+00> : vector<16x128xf32>
    %2 = tpu.matmul %0, %1, %cst {dimension_numbers = #tpu.dot_dimension_numbers<[1], [0], [0], [1], [0, 0, 1, 1], [], []>} : vector<16x20xf32>, vector<20x128xf32>, vector<16x128xf32> -> vector<16x128xf32>
    %c0_3 = arith.constant 0 : index
    %c0_4 = arith.constant 0 : index
    %3 = vector.load %arg3[%c0_3, %c0_4] : memref<1x128xf32, #tpu.memory_space<vmem>>, vector<1x128xf32>
    %4 = vector.broadcast %3 : vector<1x128xf32> to vector<16x128xf32>
    %5 = arith.addf %2, %4 : vector<16x128xf32>
    %cst_5 = arith.constant 0.000000e+00 : f32
    %6 = vector.broadcast %cst_5 : f32 to vector<16x128xf32>
    %7 = arith.maximumf %5, %6 : vector<16x128xf32>
    %c0_6 = arith.constant 0 : index
    %c0_7 = arith.constant 0 : index
    %8 = vector.load %arg4[%c0_6, %c0_7] : memref<128x1xf32, #tpu.memory_space<vmem>>, vector<128x1xf32>
    %cst_8 = arith.constant dense<0.000000e+00> : vector<16x1xf32>
    %9 = tpu.matmul %7, %8, %cst_8 {dimension_numbers = #tpu.dot_dimension_numbers<[1], [0], [0], [1], [0, 0, 1, 1], [], []>} : vector<16x128xf32>, vector<128x1xf32>, vector<16x1xf32> -> vector<16x1xf32>
    %c0_9 = arith.constant 0 : index
    %c0_10 = arith.constant 0 : index
    %10 = vector.load %arg5[%c0_9, %c0_10] : memref<1x1xf32, #tpu.memory_space<vmem>>, vector<1x1xf32>
    %11 = vector.broadcast %10 : vector<1x1xf32> to vector<16x1xf32>
    %12 = arith.addf %9, %11 : vector<16x1xf32>
    %cst_11 = arith.constant 0.000000e+00 : f32
    %13 = vector.broadcast %cst_11 : f32 to vector<16x1xf32>
    %14 = arith.subf %13, %12 : vector<16x1xf32>
    %15 = math.exp %14 : vector<16x1xf32>
    %cst_12 = arith.constant 1.000000e+00 : f32
    %16 = vector.broadcast %cst_12 : f32 to vector<16x1xf32>
    %17 = arith.addf %16, %15 : vector<16x1xf32>
    %cst_13 = arith.constant 1.000000e+00 : f32
    %18 = vector.broadcast %cst_13 : f32 to vector<16x1xf32>
    %19 = arith.divf %18, %17 : vector<16x1xf32>
    %c0_14 = arith.constant 0 : index
    %c0_15 = arith.constant 0 : index
    %20 = vector.load %arg6[%c0_14, %c0_15] : memref<16x1xf32, #tpu.memory_space<vmem>>, vector<16x1xf32>
    tpu.vector_store %arg6[%c0_14, %c0_15], %19 {strides = array<i32>} : memref<16x1xf32, #tpu.memory_space<vmem>>, vector<16x1xf32>,
    return
  }
  func.func @transform_0(%arg0: i32) -> (i32, i32) {
    %c0_i32 = arith.constant 0 : i32
    %c0_i32_0 = arith.constant 0 : i32
    return %arg0, %c0_i32 : i32, i32
  }
  func.func @transform_1(%arg0: i32) -> (i32, i32) {
    %c0_i32 = arith.constant 0 : i32
    %c0_i32_0 = arith.constant 0 : i32
    %c0_i32_1 = arith.constant 0 : i32
    return %c0_i32, %c0_i32_0 : i32, i32
  }
  func.func @transform_2(%arg0: i32) -> (i32, i32) {
    %c0_i32 = arith.constant 0 : i32
    %c0_i32_0 = arith.constant 0 : i32
    %c0_i32_1 = arith.constant 0 : i32
    return %c0_i32, %c0_i32_0 : i32, i32
  }
  func.func @transform_3(%arg0: i32) -> (i32, i32) {
    %c0_i32 = arith.constant 0 : i32
    %c0_i32_0 = arith.constant 0 : i32
    %c0_i32_1 = arith.constant 0 : i32
    return %c0_i32, %c0_i32_0 : i32, i32
  }
  func.func @transform_4(%arg0: i32) -> (i32, i32) {
    %c0_i32 = arith.constant 0 : i32
    %c0_i32_0 = arith.constant 0 : i32
    %c0_i32_1 = arith.constant 0 : i32
    return %c0_i32, %c0_i32_0 : i32, i32
  }
  func.func @transform_5(%arg0: i32) -> (i32, i32) {
    %c0_i32 = arith.constant 0 : i32
    %c0_i32_0 = arith.constant 0 : i32
    return %arg0, %c0_i32 : i32, i32
  }
}

</mosaic_0001>

<bundles_post_ra>
// kernel: tpu_custom_call.1
= control target key start
LH: loop header
LB: loop body
LE: loop exit
PB: predicated region body
PF: predicated region fallthrough
CT: control target
= control target key end

     0   :  { %s325_s0 = inlined_call_operand.vmem [shape: f32[8,20], index: 0, kind: input, shape index: {}]   ;;  %s326_s1 = inlined_call_operand.vmem [shape: f32[20,128], index: 1, kind: input, shape index: {}]   ;;  %s327_s2 = inlined_call_operand.vmem [shape: f32[1,128], index: 2, kind: input, shape index: {}]   ;;  %s328_s3 = inlined_call_operand.vmem [shape: f32[128,1], index: 3, kind: input, shape index: {}]   ;;  %s329_s4 = inlined_call_operand.<no memory space> [shape: f32[1,1], index: 4, kind: input, shape index: {}]   ;;  %s330_s5 = inlined_call_operand.vmem [shape: f32[8,1], index: 5, kind: output, shape index: {}]  }
   0x1   :  { %v10_v0 = vstv %s329_s4 }
   0x2   :  { %11 = vst [vmem:[#allocation2] sm:$0x1] %v10_v0 }
   0x3   :  { %v26_v1 = vld [vmem:[%s326_s1 + $0x10] sm:$0xf]  ;;  %vm38_vm0 = vcmask 1043456   ;;  %v25_v2 = vld [vmem:[%s326_s1 + $0x8] sm:$0xff]  ;;  %v82_v3 = vld [vmem:[%s328_s3 + $0x78] sm:$0xff]  ;;  %vm31_vm1 = vcmask 162816  }
   0x4   :  { %192 = vmatpush.msk.msra.mxu0 %vm38_vm0, %v26_v1  ;;  %v24_v4 = vld [vmem:[%s326_s1] sm:$0xff]  ;;  %87 = vmatpush.msra.mxu1 %v82_v3  ;;  %v81_v5 = vld [vmem:[%s328_s3 + $0x70] sm:$0xff]  ;;  %v80_v7 = vld [vmem:[%s328_s3 + $0x68] sm:$0xff]  ;;  %vm148_vm5 = vcmask 7168  }
   0x5   :  { %195 = vmatpush.msra.mxu2 %v82_v3  ;;  %v22_v6 = vld [vmem:[%s325_s0] sm:$0xff]  ;;  %v78_v9 = vld [vmem:[%s328_s3 + $0x58] sm:$0xff]  ;;  %v77_v10 = vld [vmem:[%s328_s3 + $0x50] sm:$0xff] }
   0x6   :  { %56 = vmatpush.msra.mxu0 %v25_v2  ;;  %88 = vmatpush.msra.mxu1 %v81_v5  ;;  %v79_v8 = vld [vmem:[%s328_s3 + $0x60] sm:$0xff]  ;;  %v23_v11 = vld [vmem:[%s325_s0 + $0x8] sm:$0xff]  ;;  %v74_v14 = vld [vmem:[%s328_s3 + $0x38] sm:$0xff] }
   0x7   :  { %196 = vmatpush.msra.mxu2 %v81_v5  ;;  %v76_v12 = vld [vmem:[%s328_s3 + $0x48] sm:$0xff]  ;;  %v75_v13 = vld [vmem:[%s328_s3 + $0x40] sm:$0xff]  ;;  %v73_v15 = vld [vmem:[%s328_s3 + $0x30] sm:$0xff] }
   0x8   :  { %57 = vmatpush.msra.mxu0 %v24_v4  ;;  %89 = vmatpush.msra.mxu1 %v80_v7  ;;  %v72_v16 = vld [vmem:[%s328_s3 + $0x28] sm:$0xff]  ;;  %v71_v17 = vld [vmem:[%s328_s3 + $0x20] sm:$0xff]  ;;  %v70_v18 = vld [vmem:[%s328_s3 + $0x18] sm:$0xff] }
   0x9   :  { %193 = vmatmul.msk.f32.vlgmr.msra.gmra.mxu0 %vm31_vm1, %v22_v6  ;;  %197 = vmatpush.msra.mxu2 %v80_v7  ;;  %v69_v19 = vld [vmem:[%s328_s3 + $0x10] sm:$0xff]  ;;  %v68_v20 = vld [vmem:[%s328_s3 + $0x8] sm:$0xff]  ;;  %v67_v21 = vld [vmem:[%s328_s3] sm:$0xff] }
   0xa   :  { %90 = vmatpush.msra.mxu1 %v79_v8  ;;  %v211_v22 = vld [vmem:[%s327_s2] ss:$0 sm:$0xff] }
   0xb   :  { %198 = vmatpush.msra.mxu2 %v79_v8  ;;  %v212_v29 = vld [vmem:[#allocation2] ss:$0 sm:$0xff] }
   0xc   :  { %91 = vmatpush.msra.mxu1 %v78_v9 }
   0xd   :  { %199 = vmatpush.msra.mxu2 %v78_v9 }
   0xe   :  { %92 = vmatpush.msra.mxu1 %v77_v10 }
   0xf   :  { %200 = vmatpush.msra.mxu2 %v77_v10 }
  0x10   :  { %93 = vmatpush.msra.mxu1 %v76_v12 }
  0x11   :  { %194 = vmatmul.msk.f32.gmra.mxu0 %vm31_vm1, %v23_v11  ;;  %201 = vmatpush.msra.mxu2 %v76_v12 }
  0x12   :  { %94 = vmatpush.msra.mxu1 %v75_v13 }
  0x13   :  { %202 = vmatpush.msra.mxu2 %v75_v13 }
  0x14   :  { %95 = vmatpush.msra.mxu1 %v74_v14 }
  0x15   :  { %203 = vmatpush.msra.mxu2 %v74_v14 }
  0x16   :  { %96 = vmatpush.msra.mxu1 %v73_v15 }
  0x17   :  { %204 = vmatpush.msra.mxu2 %v73_v15 }
  0x18   :  { %97 = vmatpush.msra.mxu1 %v72_v16 }
  0x19   :  { %205 = vmatpush.msra.mxu2 %v72_v16 }
  0x1a   :  { %98 = vmatpush.msra.mxu1 %v71_v17 }
  0x1b   :  { %206 = vmatpush.msra.mxu2 %v71_v17 }
  0x1c   :  { %99 = vmatpush.msra.mxu1 %v70_v18 }
  0x1d   :  { %207 = vmatpush.msra.mxu2 %v70_v18 }
  0x1e   :  { %100 = vmatpush.msra.mxu1 %v69_v19 }
  0x1f   :  { %208 = vmatpush.msra.mxu2 %v69_v19 }
  0x20   :  { %101 = vmatpush.msra.mxu1 %v68_v20 }
  0x21   :  { %209 = vmatpush.msra.mxu2 %v68_v20 }
  0x22   :  { %102 = vmatpush.msra.mxu1 %v67_v21 }
  0x23   :  { %210 = vmatpush.msra.mxu2 %v67_v21 }
  0x86   :  { %v59_v23 = vpop.f32.mrf.mxu0 }
  0x87   :  { %v60_v24 = vadd.f32 %v211_v22, %v59_v23 }
  0x89   :  { %v65_v25 = vmax.f32 %v60_v24, 0.0 }
  0x8b   :  { %103 = vmatmul.f32.vlgmr.msra.gmra.mxu1 %v65_v25 }
  0x8e   :  { %v62_v26 = vpop.f32.mrf.mxu0 }
  0x8f   :  { %v63_v27 = vadd.f32 %v211_v22, %v62_v26 }
  0x91   :  { %v66_v28 = vmax.f32 %v63_v27, 0.0 }
  0x93   :  { %106 = vmatmul.f32.vlgmr.msra.gmra.mxu2 %v66_v28 }
 0x108   :  { %v104_v30 = vpop.f32.mrf.mxu1 }
 0x109   :  { %v105_v31 = vadd.f32 %v212_v29, %v104_v30 }
 0x10b   :  { %v110_v32 = vsub.f32 0.0, %v105_v31 }
 0x10d   :  { %v112_v33 = vmul.f32 1.442695, %v110_v32 }
 0x10f   :  { %213 = vpow2.f32 %v112_v33 }
 0x115   :  { %v214_v34 = vpop.eup %213 }
 0x116   :  { %v116_v35 = vadd.f32 1.0, %v214_v34  ;;  %v107_v36 = vpop.f32.mrf.mxu2 }
 0x117   :  { %v108_v37 = vadd.f32 %v212_v29, %v107_v36 }
 0x118   :  { %215 = vrcp.f32 %v116_v35  ;;  %v129_v43 = vand.u32 2147483648, %v116_v35  ;;  %v127_v46 = vand.u32 2147483647, %v116_v35  ;;  %vm123_vm3 = vweird.f32 %v116_v35 }
 0x119   :  { %v111_v38 = vsub.f32 0.0, %v108_v37 }
 0x11a   :  { %v130_v49 = vor.u32 1.1754944e-38, %v129_v43  ;;  %vm128_vm6 = vcmp.eq.f32.partialorder %v127_v46, 8.507059e+37 }
 0x11b   :  { %v114_v39 = vmul.f32 1.442695, %v111_v38 }
 0x11d   :  { %217 = vpow2.f32 %v114_v39 }
 0x11e   :  { %v216_v40 = vpop.eup %215 }
 0x11f   :  { %v119_v41 = vmul.f32 %v216_v40, %v116_v35  ;;  %vm124_vm2 = vweird.f32 %v216_v40 }
 0x120   :  { %vm125_vm4 = vmor %vm123_vm3, %vm124_vm2 }
 0x121   :  { %v120_v42 = vsub.f32 1.0, %v119_v41 }
 0x123   :  { %v218_v44 = vpop.eup %217  ;;  %v121_v45 = vmul.f32 %v216_v40, %v120_v42 }
 0x124   :  { %v117_v47 = vadd.f32 1.0, %v218_v44 }
 0x125   :  { %v122_v48 = vadd.f32 %v216_v40, %v121_v45 }
 0x126   :  { %219 = vrcp.f32 %v117_v47 }
 0x127   :  { %v126_v50 = vsel %vm125_vm4, %v216_v40, %v122_v48 }
 0x128   :  { %v131_v51 = vsel %vm128_vm6, %v130_v49, %v126_v50 }
 0x129   :  { %149 = vst.msk [vmem:[#allocation3] sm:$0xff] %vm148_vm5, %v131_v51 }
 0x12c   :  { %v220_v52 = vpop.eup %219 }
 0x130   :  { %v181_v53 = vld [vmem:[#allocation3] sm:$0xff] }
 0x131   :  { %182 = vst [vmem:[%s330_s5] sm:$0xff] %v181_v53 }

</bundles_post_ra>
